<compile_context>
chip_gen: v6e
topology: v6e:2x2x1
jax: 0.10.0
libtpu: 0.0.40
codegen_flags: <defaults>
</compile_context>

<pallas_src>
import jax
import jax.numpy as jnp
from jax.experimental import pallas as pl
from jax.experimental.pallas import tpu as pltpu

SELU_ALPHA = 1.6732632423543772848170429916717
SELU_SCALE = 1.0507009873554804934193349852946

MAX_TB = 2048  # max batch lanes per grid block (sweepable; multiple of 128)


def _round_up(x, m):
    return (x + m - 1) // m * m


def _selu(x):
    # SELU as in torch.nn.SELU; exp argument clamped so the discarded branch can't overflow.
    # TODO(synk): switch to jnp.expm1 if tighter-than-1e-7 agreement with torch is needed.
    neg = SELU_ALPHA * (jnp.exp(jnp.minimum(x, 0.0)) - 1.0)
    return SELU_SCALE * jnp.where(x > 0, x, neg)


def critic_kernel(idx_ref, t1_ref, w2_ref, b2_ref, w3_ref, b3_ref, out_ref):
    """Fused transposed block: one-hot gather (MXU) + SELU MLP, batch on the lane axis."""
    idx = idx_ref[...]                                   # (1, TB) int32 state indices
    tb = idx.shape[1]
    n_states = t1_ref.shape[1]                           # padded state count (128)
    # Exact one-hot columns: onehot[s, b] = (s == idx[b]); weights are exactly 0/1 and the
    # accumulation is f32, so T1^T @ onehot reproduces T1[idx[b]] row-for-row.
    onehot = (jax.lax.broadcasted_iota(jnp.int32, (n_states, tb), 0) == idx
              ).astype(jnp.float32)                      # (Sp, TB)
    h1 = _selu(jnp.dot(t1_ref[...], onehot,
                       preferred_element_type=jnp.float32))             # (Hp, TB)
    h2 = _selu(jnp.dot(w2_ref[...], h1,
                       preferred_element_type=jnp.float32) + b2_ref[...])  # (Hp, TB)
    q = jnp.dot(w3_ref[...], h2,
                preferred_element_type=jnp.float32) + b3_ref[...]        # (A8, TB)
    out_ref[...] = q.astype(out_ref.dtype)               # lane-dense, 16x smaller store


def init_critic_params(key, action_dim, hidden_dim, max_states=100, embed_dim=1):
    """Raw parameters in the same layout as the PyTorch module (weights stored (in, out))."""
    ks = jax.random.split(key, 7)
    scale = 0.1
    return {
        "emb": jax.random.normal(ks[0], (max_states, embed_dim), jnp.float32) * scale,
        "w1": jax.random.normal(ks[1], (embed_dim, hidden_dim), jnp.float32) * scale,
        "b1": jax.random.normal(ks[2], (1, hidden_dim), jnp.float32) * scale,
        "w2": jax.random.normal(ks[3], (hidden_dim, hidden_dim), jnp.float32) * scale,
        "b2": jax.random.normal(ks[4], (1, hidden_dim), jnp.float32) * scale,
        "w3": jax.random.normal(ks[5], (hidden_dim, action_dim), jnp.float32) * scale,
        "b3": jax.random.normal(ks[6], (1, action_dim), jnp.float32) * scale,
    }


def prepare_critic_params(params):
    """One-time weight prep (outside the hot path): fold Embedding+Linear1 into a
    per-state table, transpose everything to the feature-major layout and zero-pad.
    Pure fusion/layout — forward math is unchanged (SELU(0) == 0)."""
    emb, w1, b1 = params["emb"], params["w1"], params["b1"]
    w2, b2, w3, b3 = params["w2"], params["b2"], params["w3"], params["b3"]
    n_states = emb.shape[0]
    hidden = w1.shape[1]
    action_dim = w3.shape[1]

    sp = _round_up(n_states, 128)     # one-hot contraction dim (lane-dense K)
    hp = _round_up(hidden, 128)       # hidden on sublanes/lanes of the weight tiles
    a8 = _round_up(action_dim, 8)     # actions are the output SUBLANE dim -> pad to 8 only

    t1 = emb @ w1 + b1.reshape(1, -1)  # (S, H): row s == emb[s] @ W1 + b1 exactly

    t1_t = jnp.zeros((hp, sp), jnp.float32).at[:hidden, :n_states].set(t1.T)
    w2_t = jnp.zeros((hp, hp), jnp.float32).at[:hidden, :hidden].set(w2.T)
    b2_t = jnp.zeros((hp, 1), jnp.float32).at[:hidden, 0].set(b2.reshape(-1))
    w3_t = jnp.zeros((a8, hp), jnp.float32).at[:action_dim, :hidden].set(w3.T)
    b3_t = jnp.zeros((a8, 1), jnp.float32).at[:action_dim, 0].set(b3.reshape(-1))

    return {"t1_t": t1_t, "w2_t": w2_t, "b2_t": b2_t, "w3_t": w3_t, "b3_t": b3_t,
            "action_dim": action_dim}


def _choose_tiling(batch):
    """Batch lanes per block + block count. Big tiles (<=2048) amortize grid-step
    overhead; >=2 blocks whenever there's more than one minimal 128-lane tile of work so
    the 'parallel' axis shards across both v7x TensorCores."""
    bp = _round_up(max(int(batch), 1), 128)
    min_blocks = 2 if bp > 128 else 1
    n_blocks = max(min_blocks, pl.cdiv(bp, MAX_TB))
    tb = _round_up(pl.cdiv(bp, n_blocks), 128)
    n_blocks = pl.cdiv(bp, tb)
    return tb, n_blocks, tb * n_blocks


def critic_forward(x_idx, prep):
    """x_idx: int (B, 1) or (B,) state indices. Returns (B, action_dim) f32 Q-values."""
    idx = jnp.asarray(x_idx, jnp.int32).reshape(1, -1)   # batch along the LANE axis
    batch = idx.shape[1]
    tb, n_blocks, batch_pad = _choose_tiling(batch)
    if batch_pad != batch:
        idx = jnp.pad(idx, ((0, 0), (0, batch_pad - batch)))   # pad with valid index 0

    t1_t, w2_t, b2_t = prep["t1_t"], prep["w2_t"], prep["b2_t"]
    w3_t, b3_t = prep["w3_t"], prep["b3_t"]
    hp, sp = t1_t.shape
    a8 = w3_t.shape[0]

    bcast = lambda i: (0, 0)
    weight_bytes = 4 * (hp * sp + hp * hp + hp + a8 * hp + a8)
    cost = pl.CostEstimate(
        flops=2 * batch_pad * (sp * hp + hp * hp + hp * a8),
        transcendentals=2 * batch_pad * hp,
        bytes_accessed=4 * batch_pad + weight_bytes + 4 * a8 * batch_pad,
    )

    # Note: weight specs are constant-indexed so they are fetched once by the pipeline;
    # per-block VMEM (<~4 MiB at tb=2048) is far below the default scoped limit, so no
    # vmem_limit_bytes / Buffered(1) tweaks are needed.
    out = pl.pallas_call(
        critic_kernel,
        out_shape=jax.ShapeDtypeStruct((a8, batch_pad), jnp.float32),
        grid=(n_blocks,),
        in_specs=[
            pl.BlockSpec((1, tb), lambda i: (0, i)),     # state indices (lane-major)
            pl.BlockSpec((hp, sp), bcast),               # (emb@W1+b1)^T folded table
            pl.BlockSpec((hp, hp), bcast),               # W2^T
            pl.BlockSpec((hp, 1), bcast),                # b2 (column)
            pl.BlockSpec((a8, hp), bcast),               # W3^T
            pl.BlockSpec((a8, 1), bcast),                # b3 (column)
        ],
        out_specs=pl.BlockSpec((a8, tb), lambda i: (0, i)),
        compiler_params=pltpu.CompilerParams(dimension_semantics=("parallel",)),
        cost_estimate=cost,
    )(idx, t1_t, w2_t, b2_t, w3_t, b3_t)

    # Tiny epilogue: only action_dim * batch f32 values cross this slice/transpose.
    return out[:prep["action_dim"], :batch].T


def _reference_forward(x_idx, params):
    """Plain-JAX mirror of the PyTorch module, on the raw (unprepared) params."""
    idx = jnp.asarray(x_idx, jnp.int32)
    xe = jnp.squeeze(params["emb"][idx], axis=-2)        # (B, E)

    def selu(x):
        return SELU_SCALE * jnp.where(
            x > 0, x, SELU_ALPHA * jnp.expm1(jnp.minimum(x, 0.0)))

    h1 = selu(xe @ params["w1"] + params["b1"])
    h2 = selu(h1 @ params["w2"] + params["b2"])
    return h2 @ params["w3"] + params["b3"]


if __name__ == "__main__":
    key = jax.random.PRNGKey(0)
    k_param, k_idx = jax.random.split(key)

    action_dim, hidden_dim, max_states, embed_dim = 4, 32, 100, 1
    batch = 8

    params = init_critic_params(k_param, action_dim, hidden_dim, max_states, embed_dim)
    prep = prepare_critic_params(params)    # one-time weight prep, not in the hot path

    # Small batch (single grid block).
    x_idx = jax.random.randint(k_idx, (batch, 1), 0, max_states, dtype=jnp.int32)
    out = jax.block_until_ready(critic_forward(x_idx, prep))
    ref = _reference_forward(x_idx, params)
    assert out.shape == (batch, action_dim)
    assert jnp.allclose(out, ref, atol=1e-5, rtol=1e-5), float(jnp.max(jnp.abs(out - ref)))

    # Larger, non-aligned batch: exercises padding + the >=2-block "parallel" path.
    x_big = jax.random.randint(jax.random.PRNGKey(1), (300,), 0, max_states, dtype=jnp.int32)
    out_big = jax.block_until_ready(critic_forward(x_big, prep))
    ref_big = _reference_forward(x_big.reshape(-1, 1), params)
    assert out_big.shape == (300, action_dim)
    assert jnp.allclose(out_big, ref_big, atol=1e-5, rtol=1e-5), \
        float(jnp.max(jnp.abs(out_big - ref_big)))

    print("KERNEL_OK")
</pallas_src>

<mosaic_0001>
module attributes {stable_mosaic.version = 11 : i64} {
  func.func @critic_kernel(%arg0: i32, %arg1: memref<1x128xi32, #tpu.memory_space<vmem>>, %arg2: memref<128x128xf32, #tpu.memory_space<vmem>>, %arg3: memref<128x128xf32, #tpu.memory_space<vmem>>, %arg4: memref<128x1xf32, #tpu.memory_space<vmem>>, %arg5: memref<8x128xf32, #tpu.memory_space<vmem>>, %arg6: memref<8x1xf32, #tpu.memory_space<vmem>>, %arg7: memref<8x128xf32, #tpu.memory_space<vmem>>) attributes {dimension_semantics = [#tpu.dimension_semantics<parallel>], iteration_bounds = array<i64: 1>, scalar_prefetch = 0 : i64, scratch_operands = 0 : i64, tpu.core_type = #tpu.core_type<tc>, window_params = [{transform_indices = @transform_0, window_bounds = array<i64: 1, 128>}, {pipeline_mode = #tpu.pipeline_mode<synchronous>, transform_indices = @transform_1, window_bounds = array<i64: 128, 128>}, {pipeline_mode = #tpu.pipeline_mode<synchronous>, transform_indices = @transform_2, window_bounds = array<i64: 128, 128>}, {pipeline_mode = #tpu.pipeline_mode<synchronous>, transform_indices = @transform_3, window_bounds = array<i64: 128, 1>}, {pipeline_mode = #tpu.pipeline_mode<synchronous>, transform_indices = @transform_4, window_bounds = array<i64: 8, 128>}, {pipeline_mode = #tpu.pipeline_mode<synchronous>, transform_indices = @transform_5, window_bounds = array<i64: 8, 1>}, {transform_indices = @transform_6, window_bounds = array<i64: 8, 128>}]} {
    %c0 = arith.constant 0 : index
    %c0_0 = arith.constant 0 : index
    %0 = vector.load %arg1[%c0, %c0_0] : memref<1x128xi32, #tpu.memory_space<vmem>>, vector<1x128xi32>
    %1 = tpu.iota {dimensions = array<i32: 0>} : vector<128x128xi32>
    %2 = vector.broadcast %0 : vector<1x128xi32> to vector<128x128xi32>
    %3 = arith.cmpi eq, %1, %2 : vector<128x128xi32>
    %4 = arith.extui %3 : vector<128x128xi1> to vector<128x128xi32>
    %5 = arith.sitofp %4 : vector<128x128xi32> to vector<128x128xf32>
    %c0_1 = arith.constant 0 : index
    %c0_2 = arith.constant 0 : index
    %6 = vector.load %arg2[%c0_1, %c0_2] : memref<128x128xf32, #tpu.memory_space<vmem>>, vector<128x128xf32>
    %cst = arith.constant dense<0.000000e+00> : vector<128x128xf32>
    %7 = tpu.matmul %6, %5, %cst {dimension_numbers = #tpu.dot_dimension_numbers<[1], [0], [0], [1], [0, 0, 1, 1], [], []>} : vector<128x128xf32>, vector<128x128xf32>, vector<128x128xf32> -> vector<128x128xf32>
    %cst_3 = arith.constant 0.000000e+00 : f32
    %8 = vector.broadcast %cst_3 : f32 to vector<128x128xf32>
    %9 = arith.minimumf %7, %8 : vector<128x128xf32>
    %10 = math.exp %9 : vector<128x128xf32>
    %cst_4 = arith.constant 1.000000e+00 : f32
    %11 = vector.broadcast %cst_4 : f32 to vector<128x128xf32>
    %12 = arith.subf %10, %11 : vector<128x128xf32>
    %cst_5 = arith.constant 1.67326319 : f32
    %13 = vector.broadcast %cst_5 : f32 to vector<128x128xf32>
    %14 = arith.mulf %13, %12 : vector<128x128xf32>
    %cst_6 = arith.constant 0.000000e+00 : f32
    %15 = vector.broadcast %cst_6 : f32 to vector<128x128xf32>
    %16 = arith.cmpf ogt, %7, %15 : vector<128x128xf32>
    %17 = arith.select %16, %7, %14 : vector<128x128xi1>, vector<128x128xf32>
    %cst_7 = arith.constant 1.05070102 : f32
    %18 = vector.broadcast %cst_7 : f32 to vector<128x128xf32>
    %19 = arith.mulf %18, %17 : vector<128x128xf32>
    %c0_8 = arith.constant 0 : index
    %c0_9 = arith.constant 0 : index
    %20 = vector.load %arg3[%c0_8, %c0_9] : memref<128x128xf32, #tpu.memory_space<vmem>>, vector<128x128xf32>
    %cst_10 = arith.constant dense<0.000000e+00> : vector<128x128xf32>
    %21 = tpu.matmul %20, %19, %cst_10 {dimension_numbers = #tpu.dot_dimension_numbers<[1], [0], [0], [1], [0, 0, 1, 1], [], []>} : vector<128x128xf32>, vector<128x128xf32>, vector<128x128xf32> -> vector<128x128xf32>
    %c0_11 = arith.constant 0 : index
    %c0_12 = arith.constant 0 : index
    %22 = vector.load %arg4[%c0_11, %c0_12] : memref<128x1xf32, #tpu.memory_space<vmem>>, vector<128x1xf32>
    %23 = vector.broadcast %22 : vector<128x1xf32> to vector<128x128xf32>
    %24 = arith.addf %21, %23 : vector<128x128xf32>
    %cst_13 = arith.constant 0.000000e+00 : f32
    %25 = vector.broadcast %cst_13 : f32 to vector<128x128xf32>
    %26 = arith.minimumf %24, %25 : vector<128x128xf32>
    %27 = math.exp %26 : vector<128x128xf32>
    %cst_14 = arith.constant 1.000000e+00 : f32
    %28 = vector.broadcast %cst_14 : f32 to vector<128x128xf32>
    %29 = arith.subf %27, %28 : vector<128x128xf32>
    %cst_15 = arith.constant 1.67326319 : f32
    %30 = vector.broadcast %cst_15 : f32 to vector<128x128xf32>
    %31 = arith.mulf %30, %29 : vector<128x128xf32>
    %cst_16 = arith.constant 0.000000e+00 : f32
    %32 = vector.broadcast %cst_16 : f32 to vector<128x128xf32>
    %33 = arith.cmpf ogt, %24, %32 : vector<128x128xf32>
    %34 = arith.select %33, %24, %31 : vector<128x128xi1>, vector<128x128xf32>
    %cst_17 = arith.constant 1.05070102 : f32
    %35 = vector.broadcast %cst_17 : f32 to vector<128x128xf32>
    %36 = arith.mulf %35, %34 : vector<128x128xf32>
    %c0_18 = arith.constant 0 : index
    %c0_19 = arith.constant 0 : index
    %37 = vector.load %arg5[%c0_18, %c0_19] : memref<8x128xf32, #tpu.memory_space<vmem>>, vector<8x128xf32>
    %cst_20 = arith.constant dense<0.000000e+00> : vector<8x128xf32>
    %38 = tpu.matmul %37, %36, %cst_20 {dimension_numbers = #tpu.dot_dimension_numbers<[1], [0], [0], [1], [0, 0, 1, 1], [], []>} : vector<8x128xf32>, vector<128x128xf32>, vector<8x128xf32> -> vector<8x128xf32>
    %c0_21 = arith.constant 0 : index
    %c0_22 = arith.constant 0 : index
    %39 = vector.load %arg6[%c0_21, %c0_22] : memref<8x1xf32, #tpu.memory_space<vmem>>, vector<8x1xf32>
    %40 = vector.broadcast %39 : vector<8x1xf32> to vector<8x128xf32>
    %41 = arith.addf %38, %40 : vector<8x128xf32>
    %c0_23 = arith.constant 0 : index
    %c0_24 = arith.constant 0 : index
    %42 = vector.load %arg7[%c0_23, %c0_24] : memref<8x128xf32, #tpu.memory_space<vmem>>, vector<8x128xf32>
    tpu.vector_store %arg7[%c0_23, %c0_24], %41 {strides = array<i32>} : memref<8x128xf32, #tpu.memory_space<vmem>>, vector<8x128xf32>,
    return
  }
  func.func @transform_0(%arg0: i32) -> (i32, i32) {
    %c0_i32 = arith.constant 0 : i32
    %c0_i32_0 = arith.constant 0 : i32
    return %c0_i32, %arg0 : i32, i32
  }
  func.func @transform_1(%arg0: i32) -> (i32, i32) {
    %c0_i32 = arith.constant 0 : i32
    %c0_i32_0 = arith.constant 0 : i32
    %c0_i32_1 = arith.constant 0 : i32
    return %c0_i32, %c0_i32_0 : i32, i32
  }
  func.func @transform_2(%arg0: i32) -> (i32, i32) {
    %c0_i32 = arith.constant 0 : i32
    %c0_i32_0 = arith.constant 0 : i32
    %c0_i32_1 = arith.constant 0 : i32
    return %c0_i32, %c0_i32_0 : i32, i32
  }
  func.func @transform_3(%arg0: i32) -> (i32, i32) {
    %c0_i32 = arith.constant 0 : i32
    %c0_i32_0 = arith.constant 0 : i32
    %c0_i32_1 = arith.constant 0 : i32
    return %c0_i32, %c0_i32_0 : i32, i32
  }
  func.func @transform_4(%arg0: i32) -> (i32, i32) {
    %c0_i32 = arith.constant 0 : i32
    %c0_i32_0 = arith.constant 0 : i32
    %c0_i32_1 = arith.constant 0 : i32
    return %c0_i32, %c0_i32_0 : i32, i32
  }
  func.func @transform_5(%arg0: i32) -> (i32, i32) {
    %c0_i32 = arith.constant 0 : i32
    %c0_i32_0 = arith.constant 0 : i32
    %c0_i32_1 = arith.constant 0 : i32
    return %c0_i32, %c0_i32_0 : i32, i32
  }
  func.func @transform_6(%arg0: i32) -> (i32, i32) {
    %c0_i32 = arith.constant 0 : i32
    %c0_i32_0 = arith.constant 0 : i32
    return %c0_i32, %arg0 : i32, i32
  }
}

</mosaic_0001>

<bundles_post_ra>
// kernel: tpu_custom_call.1
= control target key start
LH: loop header
LB: loop body
LE: loop exit
PB: predicated region body
PF: predicated region fallthrough
CT: control target
= control target key end

     0   :  { %11 = vsyncpa [#allocation3], 0  ;;  %s1660_s0 = inlined_call_operand.vmem [shape: s32[1,128], index: 0, kind: input, shape index: {}]   ;;  %s1661_s1 = inlined_call_operand.vmem [shape: f32[128,128], index: 1, kind: input, shape index: {}]   ;;  %s1662_s2 = inlined_call_operand.hbm [shape: f32[128,128], index: 2, kind: input, shape index: {}]   ;;  %s1663_s3 = inlined_call_operand.vmem [shape: f32[128,1], index: 3, kind: input, shape index: {}]   ;;  %s1664_s4 = inlined_call_operand.vmem [shape: f32[8,128], index: 4, kind: input, shape index: {}]   ;;  %s1665_s5 = inlined_call_operand.vmem [shape: f32[8,1], index: 5, kind: input, shape index: {}]   ;;  %s1666_s6 = inlined_call_operand.hbm [shape: f32[8,128], index: 6, kind: output, shape index: {}]  }
   0x1   :  { %12 = vsyncpa [#allocation4], 0  ;;  %s1286_s21 = smov [#allocation2]  }
   0x2   :  { %s22_s22 = sshll.u32 %s1286_s21, 4  ;;  %s23_s22 = int_to_ptr.vmem [resolvable:$true] %s22_s22 }
   0x3   :  { %s1250_s23 = scalar_lea.vmem %s23_s22, 2048  ;;  %p1255_p1 = scmp.lt.s32.totalorder %s23_s22, %s23_s22 }
   0x4   :  { %p1251_p0 = scmp.ne.s32.totalorder %s23_s22, %s1250_s23  ;;  %p1256_p2 = scmp.lt.s32.totalorder %s1250_s23, %s1250_s23 }
   0x6   :  { %p1257_p3 = por %p1256_p2, %p1255_p1 }
   0x8   :  { %p1258_p4 = pnand %p1257_p3, %p1251_p0 }
   0xa   :  { %1261 = shalt.err (!%p1258_p4)
}
   0xb   :  { %s1287_s24 = smov 128   ;;  %s1288_s25 = smov 8  }
   0xc   :  { %28 = dma.hbm_to_vmem [thread:$0]  %s1662_s2, 2048, %s23_s22, [#allocation3], %s1287_s24, %s1287_s24, %s1288_s25  }
   0xd   :  { %1282 = dma.done.wait [#allocation3], 2048  }
   0xe   :  { %1283 = vsyncadd [#allocation3], 4294965248  ;;  %v39_v0 = vlaneseq  ;;  %v1340_v5 = vld [vmem:[%s1660_s0] ss:$0 sm:$0xff]  ;;  %v1289_v8 = vmov 1.0   ;;  %v109_v20 = vld [vmem:[%s1661_s1 + $0x8] sm:$0xff] }
   0xf   :  { %v108_v6 = vld [vmem:[%s1661_s1] sm:$0xff]  ;;  %v110_v21 = vld [vmem:[%s1661_s1 + $0x10] sm:$0xff]  ;;  %v111_v22 = vld [vmem:[%s1661_s1 + $0x18] sm:$0xff]  ;;  %v1290_v38 = vmov 0   ;;  %s1293_s16 = smov [#allocation5]  }
  0x10   :  { %v1332_v1 = vshrl.u32 %v39_v0, 7  ;;  %1053 = vmatprep.mubr.f32.mxu0 %v108_v6  ;;  %v112_v23 = vld [vmem:[%s1661_s1 + $0x20] sm:$0xff]  ;;  %v113_v24 = vld [vmem:[%s1661_s1 + $0x28] sm:$0xff]  ;;  %v114_v25 = vld [vmem:[%s1661_s1 + $0x30] sm:$0xff]  ;;  %1176 = vset.pattern.permute.xlu0 %v1290_v38  ;;  %s866_s17 = sshll.u32 %s1293_s16, 4  ;;  %s867_s17 = int_to_ptr.vmem [resolvable:$true] %s866_s17 }
  0x11   :  { %v115_v26 = vld [vmem:[%s1661_s1 + $0x38] sm:$0xff]  ;;  %v116_v27 = vld [vmem:[%s1661_s1 + $0x40] sm:$0xff]  ;;  %v117_v28 = vld [vmem:[%s1661_s1 + $0x48] sm:$0xff]  ;;  %1177 = vset.pattern.permute.xlu1 %v1290_v38  ;;  %s1262_s18 = scalar_lea.vmem %s867_s17, 128  ;;  %p1267_p6 = scmp.lt.s32.totalorder %s867_s17, %s867_s17 }
  0x12   :  { %v55_v2 = vadd.s32 120, %v1332_v1  ;;  %v54_v3 = vadd.s32 112, %v1332_v1  ;;  %v53_v4 = vadd.s32 104, %v1332_v1  ;;  %v52_v7 = vadd.s32 96, %v1332_v1  ;;  %v118_v29 = vld [vmem:[%s1661_s1 + $0x50] sm:$0xff]  ;;  %v119_v30 = vld [vmem:[%s1661_s1 + $0x58] sm:$0xff]  ;;  %p1263_p5 = scmp.ne.s32.totalorder %s867_s17, %s1262_s18  ;;  %p1268_p7 = scmp.lt.s32.totalorder %s1262_s18, %s1262_s18 }
  0x13   :  { %v51_v9 = vadd.s32 88, %v1332_v1  ;;  %v50_v10 = vadd.s32 80, %v1332_v1  ;;  %v49_v11 = vadd.s32 72, %v1332_v1  ;;  %v48_v12 = vadd.s32 64, %v1332_v1  ;;  %v120_v31 = vld [vmem:[%s1661_s1 + $0x60] sm:$0xff]  ;;  %v121_v32 = vld [vmem:[%s1661_s1 + $0x68] sm:$0xff] }
  0x14   :  { %vm75_vm0 = vcmp.eq.s32.totalorder %v55_v2, %v1340_v5  ;;  %vm74_vm1 = vcmp.eq.s32.totalorder %v54_v3, %v1340_v5  ;;  %vm73_vm2 = vcmp.eq.s32.totalorder %v53_v4, %v1340_v5  ;;  %vm72_vm3 = vcmp.eq.s32.totalorder %v52_v7, %v1340_v5  ;;  %v122_v33 = vld [vmem:[%s1661_s1 + $0x70] sm:$0xff]  ;;  %v123_v34 = vld [vmem:[%s1661_s1 + $0x78] sm:$0xff]  ;;  %v397_v35 = vld [vmem:[#allocation2] sm:$0xff]  ;;  %p1269_p8 = por %p1268_p7, %p1267_p6 }
  0x15   :  { %1021 = vmatprep.subr.msk.mxu0 %vm75_vm0, %v1289_v8  ;;  %vm71_vm4 = vcmp.eq.s32.totalorder %v51_v9, %v1340_v5  ;;  %vm70_vm5 = vcmp.eq.s32.totalorder %v50_v10, %v1340_v5  ;;  %vm69_vm6 = vcmp.eq.s32.totalorder %v49_v11, %v1340_v5  ;;  %v47_v13 = vadd.s32 56, %v1332_v1  ;;  %1109 = vmatprep.mubr.f32.mxu1 %v397_v35  ;;  %v428_v36 = vld [vmem:[%s1663_s3 + $0x78] sm:$0xff]  ;;  %v426_v37 = vld [vmem:[%s1663_s3 + $0x68] sm:$0xff]  ;;  %v427_v39 = vld [vmem:[%s1663_s3 + $0x70] sm:$0xff] }
  0x16   :  { %1022 = vmatpush3.msk.msra.mxu0 %vm75_vm0, %v1289_v8  ;;  %vm68_vm7 = vcmp.eq.s32.totalorder %v48_v12, %v1340_v5  ;;  %v46_v14 = vadd.s32 48, %v1332_v1  ;;  %v45_v15 = vadd.s32 40, %v1332_v1  ;;  %v44_v16 = vadd.s32 32, %v1332_v1  ;;  %506 = vperm.xlu0 %1176, %v428_v36   ;;  %v425_v40 = vld [vmem:[%s1663_s3 + $0x60] sm:$0xff]  ;;  %v424_v41 = vld [vmem:[%s1663_s3 + $0x58] sm:$0xff]  ;;  %v423_v42 = vld [vmem:[%s1663_s3 + $0x50] sm:$0xff]  ;;  %p1270_p9 = pnand %p1269_p8, %p1263_p5 }
  0x17   :  { %1023 = vmatprep.subr.msk.mxu0 %vm74_vm1, %v1289_v8  ;;  %vm67_vm8 = vcmp.eq.s32.totalorder %v47_v13, %v1340_v5  ;;  %v43_v17 = vadd.s32 24, %v1332_v1  ;;  %v42_v18 = vadd.s32 16, %v1332_v1  ;;  %v41_v19 = vadd.s32 8, %v1332_v1  ;;  %496 = vperm.xlu1 %1177, %v426_v37   ;;  %v422_v43 = vld [vmem:[%s1663_s3 + $0x48] sm:$0xff]  ;;  %v421_v44 = vld [vmem:[%s1663_s3 + $0x40] sm:$0xff]  ;;  %v420_v47 = vld [vmem:[%s1663_s3 + $0x38] sm:$0xff] }
  0x18   :  { %1024 = vmatpush3.msk.msra.mxu0 %vm74_vm1, %v1289_v8  ;;  %vm66_vm9 = vcmp.eq.s32.totalorder %v46_v14, %v1340_v5  ;;  %vm65_vm10 = vcmp.eq.s32.totalorder %v45_v15, %v1340_v5  ;;  %vm64_vm11 = vcmp.eq.s32.totalorder %v44_v16, %v1340_v5  ;;  %vm60_vm15 = vcmp.eq.s32.totalorder %v1332_v1, %v1340_v5  ;;  %v419_v48 = vld [vmem:[%s1663_s3 + $0x30] sm:$0xff]  ;;  %v418_v51 = vld [vmem:[%s1663_s3 + $0x28] sm:$0xff]  ;;  %v417_v52 = vld [vmem:[%s1663_s3 + $0x20] sm:$0xff] }
  0x19   :  { %1025 = vmatprep.subr.msk.mxu0 %vm73_vm2, %v1289_v8  ;;  %vm63_vm12 = vcmp.eq.s32.totalorder %v43_v17, %v1340_v5  ;;  %vm62_vm13 = vcmp.eq.s32.totalorder %v42_v18, %v1340_v5  ;;  %vm61_vm14 = vcmp.eq.s32.totalorder %v41_v19, %v1340_v5  ;;  %v416_v55 = vld [vmem:[%s1663_s3 + $0x18] sm:$0xff]  ;;  %v415_v56 = vld [vmem:[%s1663_s3 + $0x10] sm:$0xff]  ;;  %v414_v59 = vld [vmem:[%s1663_s3 + $0x8] sm:$0xff] }
  0x1a   :  { %1026 = vmatpush3.msk.msra.mxu0 %vm73_vm2, %v1289_v8  ;;  %501 = vperm.xlu0 %1176, %v427_v39   ;;  %v413_v60 = vld [vmem:[%s1663_s3] sm:$0xff] }
  0x1b   :  { %1027 = vmatprep.subr.msk.mxu0 %vm72_vm3, %v1289_v8  ;;  %491 = vperm.xlu1 %1177, %v425_v40   ;;  %v783_v63 = vld [vmem:[%s1665_s5] sm:$0xff] }
  0x1c   :  { %1028 = vmatpush3.msk.msra.mxu0 %vm72_vm3, %v1289_v8 }
  0x1d   :  { %1029 = vmatprep.subr.msk.mxu0 %vm71_vm4, %v1289_v8 }
  0x1e   :  { %1030 = vmatpush3.msk.msra.mxu0 %vm71_vm4, %v1289_v8  ;;  %486 = vperm.xlu0 %1176, %v424_v41  }
  0x1f   :  { %1031 = vmatprep.subr.msk.mxu0 %vm70_vm5, %v1289_v8  ;;  %481 = vperm.xlu1 %1177, %v423_v42  }
  0x20   :  { %1032 = vmatpush3.msk.msra.mxu0 %vm70_vm5, %v1289_v8 }
  0x21   :  { %1033 = vmatprep.subr.msk.mxu0 %vm69_vm6, %v1289_v8 }
  0x22   :  { %1034 = vmatpush3.msk.msra.mxu0 %vm69_vm6, %v1289_v8  ;;  %476 = vperm.xlu0 %1176, %v422_v43  }
  0x23   :  { %1035 = vmatprep.subr.msk.mxu0 %vm68_vm7, %v1289_v8  ;;  %471 = vperm.xlu1 %1177, %v421_v44  }
  0x24   :  { %1036 = vmatpush3.msk.msra.mxu0 %vm68_vm7, %v1289_v8 }
  0x25   :  { %1037 = vmatprep.subr.msk.mxu0 %vm67_vm8, %v1289_v8 }
  0x26   :  { %1038 = vmatpush3.msk.msra.mxu0 %vm67_vm8, %v1289_v8  ;;  %466 = vperm.xlu0 %1176, %v420_v47  }
  0x27   :  { %1039 = vmatprep.subr.msk.mxu0 %vm66_vm9, %v1289_v8  ;;  %461 = vperm.xlu1 %1177, %v419_v48  }
  0x28   :  { %1040 = vmatpush3.msk.msra.mxu0 %vm66_vm9, %v1289_v8 }
  0x29   :  { %1041 = vmatprep.subr.msk.mxu0 %vm65_vm10, %v1289_v8 }
  0x2a   :  { %1042 = vmatpush3.msk.msra.mxu0 %vm65_vm10, %v1289_v8  ;;  %456 = vperm.xlu0 %1176, %v418_v51  }
  0x2b   :  { %1043 = vmatprep.subr.msk.mxu0 %vm64_vm11, %v1289_v8  ;;  %451 = vperm.xlu1 %1177, %v417_v52  }
  0x2c   :  { %1044 = vmatpush3.msk.msra.mxu0 %vm64_vm11, %v1289_v8 }
  0x2d   :  { %1045 = vmatprep.subr.msk.mxu0 %vm63_vm12, %v1289_v8 }
  0x2e   :  { %1046 = vmatpush3.msk.msra.mxu0 %vm63_vm12, %v1289_v8  ;;  %446 = vperm.xlu0 %1176, %v416_v55  }
  0x2f   :  { %1047 = vmatprep.subr.msk.mxu0 %vm62_vm13, %v1289_v8  ;;  %441 = vperm.xlu1 %1177, %v415_v56  }
  0x30   :  { %1048 = vmatpush3.msk.msra.mxu0 %vm62_vm13, %v1289_v8 }
  0x31   :  { %1049 = vmatprep.subr.msk.mxu0 %vm61_vm14, %v1289_v8 }
  0x32   :  { %1050 = vmatpush3.msk.msra.mxu0 %vm61_vm14, %v1289_v8  ;;  %436 = vperm.xlu0 %1176, %v414_v59  }
  0x33   :  { %1051 = vmatprep.subr.msk.mxu0 %vm60_vm15, %v1289_v8  ;;  %431 = vperm.xlu1 %1177, %v413_v60  }
  0x34   :  { %1052 = vmatpush3.msk.msra.mxu0 %vm60_vm15, %v1289_v8 }
  0x35   :  { %1054 = vmatmul.mubr.f32.vlgmr.msra.gmra.mxu0 %v109_v20 }
  0x36   :  { %1056 = vmatprep.mubr.f32.mxu0 %v110_v21  ;;  %786 = vperm.xlu0 %1176, %v783_v63  }
  0x39   :  { %1057 = vmatmul.mubr.f32.gmra.mxu0 %v111_v22 }
  0x3a   :  { %1059 = vmatprep.mubr.f32.mxu0 %v112_v23 }
  0x3d   :  { %1060 = vmatmul.mubr.f32.gmra.mxu0 %v113_v24 }
  0x3e   :  { %1062 = vmatprep.mubr.f32.mxu0 %v114_v25 }
  0x41   :  { %1063 = vmatmul.mubr.f32.gmra.mxu0 %v115_v26 }
  0x42   :  { %1065 = vmatprep.mubr.f32.mxu0 %v116_v27 }
  0x45   :  { %1066 = vmatmul.mubr.f32.gmra.mxu0 %v117_v28 }
  0x46   :  { %1068 = vmatprep.mubr.f32.mxu0 %v118_v29 }
  0x49   :  { %1069 = vmatmul.mubr.f32.gmra.mxu0 %v119_v30 }
  0x4a   :  { %1071 = vmatprep.mubr.f32.mxu0 %v120_v31 }
  0x4d   :  { %1072 = vmatmul.mubr.f32.gmra.mxu0 %v121_v32 }
  0x4e   :  { %1074 = vmatprep.mubr.f32.mxu0 %v122_v33 }
  0x51   :  { %1075 = vmatmul.mubr.f32.gmra.mxu0 %v123_v34 }
  0xf5   :  { %v1443_v45 = vpop.f32.mrf.mxu0 }
  0xf6   :  { %v270_v34 = vmin.f32 %v1443_v45, 0.0  ;;  %vm350_vm14 = vcmp.gt.f32.partialorder %v1443_v45, 0.0 }
  0xf7   :  { %v1445_v46 = vpop.f32.mrf.mxu0 }
  0xf8   :  { %v269_v39 = vmin.f32 %v1445_v46, 0.0  ;;  %v287_v47 = vmul.f32 1.442695, %v270_v34  ;;  %vm349_vm15 = vcmp.gt.f32.partialorder %v1445_v46, 0.0 }
  0xf9   :  { %v1453_v49 = vpop.f32.mrf.mxu0 }
  0xfa   :  { %v272_v28 = vmin.f32 %v1453_v49, 0.0  ;;  %v285_v59 = vmul.f32 1.442695, %v269_v39  ;;  %vm352_vm12 = vcmp.gt.f32.partialorder %v1453_v49, 0.0 }
  0xfb   :  { %v1455_v50 = vpop.f32.mrf.mxu0 }
  0xfc   :  { %v271_v31 = vmin.f32 %v1455_v50, 0.0  ;;  %v291_v36 = vmul.f32 1.442695, %v272_v28  ;;  %vm351_vm13 = vcmp.gt.f32.partialorder %v1455_v50, 0.0 }
  0xfd   :  { %v1463_v53 = vpop.f32.mrf.mxu0 }
  0xfe   :  { %v274_v24 = vmin.f32 %v1463_v53, 0.0  ;;  %v289_v40 = vmul.f32 1.442695, %v271_v31  ;;  %vm354_vm10 = vcmp.gt.f32.partialorder %v1463_v53, 0.0 }
  0xff   :  { %v1465_v54 = vpop.f32.mrf.mxu0 }
 0x100   :  { %v273_v26 = vmin.f32 %v1465_v54, 0.0  ;;  %v295_v29 = vmul.f32 1.442695, %v274_v24  ;;  %vm353_vm11 = vcmp.gt.f32.partialorder %v1465_v54, 0.0 }
 0x101   :  { %v1473_v57 = vpop.f32.mrf.mxu0 }
 0x102   :  { %v276_v20 = vmin.f32 %v1473_v57, 0.0  ;;  %v293_v32 = vmul.f32 1.442695, %v273_v26  ;;  %vm356_vm8 = vcmp.gt.f32.partialorder %v1473_v57, 0.0 }
 0x103   :  { %v1475_v58 = vpop.f32.mrf.mxu0 }
 0x104   :  { %v275_v22 = vmin.f32 %v1475_v58, 0.0  ;;  %v299_v25 = vmul.f32 1.442695, %v276_v20  ;;  %vm355_vm9 = vcmp.gt.f32.partialorder %v1475_v58, 0.0 }
 0x105   :  { %v1483_v61 = vpop.f32.mrf.mxu0 }
 0x106   :  { %v278_v11 = vmin.f32 %v1483_v61, 0.0  ;;  %v297_v27 = vmul.f32 1.442695, %v275_v22  ;;  %vm358_vm6 = vcmp.gt.f32.partialorder %v1483_v61, 0.0 }
 0x107   :  { %v1485_v62 = vpop.f32.mrf.mxu0 }
 0x108   :  { %v277_v16 = vmin.f32 %v1485_v62, 0.0  ;;  %v303_v21 = vmul.f32 1.442695, %v278_v11  ;;  %vm357_vm7 = vcmp.gt.f32.partialorder %v1485_v62, 0.0 }
 0x109   :  { %v1490_v0 = vpop.f32.mrf.mxu0 }
 0x10a   :  { %v280_v3 = vmin.f32 %v1490_v0, 0.0  ;;  %v301_v23 = vmul.f32 1.442695, %v277_v16  ;;  %vm360_vm4 = vcmp.gt.f32.partialorder %v1490_v0, 0.0 }
 0x10b   :  { %v1492_v1 = vpop.f32.mrf.mxu0 }
 0x10c   :  { %v279_v7 = vmin.f32 %v1492_v1, 0.0  ;;  %v307_v10 = vmul.f32 1.442695, %v280_v3  ;;  %vm359_vm5 = vcmp.gt.f32.partialorder %v1492_v1, 0.0 }
 0x10d   :  { %v1494_v2 = vpop.f32.mrf.mxu0 }
 0x10e   :  { %v282_v4 = vmin.f32 %v1494_v2, 0.0  ;;  %v305_v17 = vmul.f32 1.442695, %v279_v7  ;;  %vm362_vm2 = vcmp.gt.f32.partialorder %v1494_v2, 0.0 }
 0x10f   :  { %v1498_v5 = vpop.f32.mrf.mxu0 }
 0x110   :  { %v311_v6 = vmul.f32 1.442695, %v282_v4  ;;  %v281_v8 = vmin.f32 %v1498_v5, 0.0  ;;  %vm361_vm3 = vcmp.gt.f32.partialorder %v1498_v5, 0.0 }
 0x111   :  { %v1502_v9 = vpop.f32.mrf.mxu0 }
 0x112   :  { %1178 = vpow2.f32 %v311_v6  ;;  %v309_v12 = vmul.f32 1.442695, %v281_v8  ;;  %v284_v13 = vmin.f32 %v1502_v9, 0.0  ;;  %vm364_vm0 = vcmp.gt.f32.partialorder %v1502_v9, 0.0 }
 0x113   :  { %v260_v14 = vpop.f32.mrf.mxu0 }
 0x114   :  { %v283_v15 = vmin.f32 %v260_v14, 0.0  ;;  %1180 = vpow2.f32 %v309_v12  ;;  %v315_v18 = vmul.f32 1.442695, %v284_v13  ;;  %vm363_vm1 = vcmp.gt.f32.partialorder %v260_v14, 0.0 }
 0x115   :  { %1182 = vpow2.f32 %v307_v10 }
 0x116   :  { %v313_v19 = vmul.f32 1.442695, %v283_v15  ;;  %1184 = vpow2.f32 %v315_v18 }
 0x118   :  { %1186 = vpow2.f32 %v313_v19 }
 0x119   :  { %1188 = vpow2.f32 %v305_v17 }
 0x11a   :  { %1190 = vpow2.f32 %v303_v21 }
 0x11b   :  { %1192 = vpow2.f32 %v301_v23 }
 0x11c   :  { %1194 = vpow2.f32 %v299_v25 }
 0x11d   :  { %1196 = vpow2.f32 %v297_v27 }
 0x11e   :  { %1198 = vpow2.f32 %v295_v29 }
 0x11f   :  { %v1179_v30 = vpop.eup %1178  ;;  %1200 = vpow2.f32 %v293_v32 }
 0x120   :  { %v921_v37 = vadd.f32 -1.0, %v1179_v30  ;;  %1202 = vpow2.f32 %v291_v36 }
 0x121   :  { %v1181_v33 = vpop.eup %1180  ;;  %1204 = vpow2.f32 %v289_v40 }
 0x122   :  { %v1183_v35 = vpop.eup %1182  ;;  %v920_v42 = vadd.f32 -1.0, %v1181_v33  ;;  %v346_v52 = vmul.f32 1.6732632, %v921_v37  ;;  %1206 = vpow2.f32 %v287_v47 }
 0x123   :  { %v1185_v38 = vpop.eup %1184  ;;  %v919_v51 = vadd.f32 -1.0, %v1183_v35  ;;  %1208 = vpow2.f32 %v285_v59 }
 0x124   :  { %v923_v43 = vadd.f32 -1.0, %v1185_v38  ;;  %v345_v3 = vmul.f32 1.6732632, %v920_v42  ;;  %v378_v12 = vsel %vm362_vm2, %v1494_v2, %v346_v52 }
 0x125   :  { %v1187_v41 = vpop.eup %1186  ;;  %v344_v11 = vmul.f32 1.6732632, %v919_v51 }
 0x126   :  { %v1189_v44 = vpop.eup %1188  ;;  %v922_v48 = vadd.f32 -1.0, %v1187_v41  ;;  %v348_v55 = vmul.f32 1.6732632, %v923_v43 }
 0x127   :  { %v1191_v56 = vpop.eup %1190  ;;  %v918_v63 = vadd.f32 -1.0, %v1189_v44  ;;  %v376_v2 = vsel %vm360_vm4, %v1490_v0, %v344_v11  ;;  %v403_v11 = vld [vmem:[#allocation2 + $0x30] sm:$0xff] }
 0x128   :  { %v347_v60 = vmul.f32 1.6732632, %v922_v48  ;;  %v380_v4 = vsel %vm364_vm0, %v1502_v9, %v348_v55  ;;  %v1193_v6 = vpop.eup %1192  ;;  %v917_v10 = vadd.f32 -1.0, %v1191_v56  ;;  %v377_v9 = vsel %vm361_vm3, %v1498_v5, %v345_v3 }
 0x129   :  { %v396_v8 = vmul.f32 1.050701, %v380_v4  ;;  %v1195_v15 = vpop.eup %1194  ;;  %v916_v16 = vadd.f32 -1.0, %v1193_v6  ;;  %v343_v17 = vmul.f32 1.6732632, %v918_v63  ;;  %vm1292_vm0 = vmmov 0  }
 0x12a   :  { %v379_v7 = vsel %vm363_vm1, %v260_v14, %v347_v60  ;;  %v1197_v18 = vpop.eup %1196  ;;  %v394_v14 = vmul.f32 1.050701, %v378_v12  ;;  %v915_v19 = vadd.f32 -1.0, %v1195_v15  ;;  %v342_v20 = vmul.f32 1.6732632, %v917_v10  ;;  %v402_v10 = vld [vmem:[#allocation2 + $0x28] sm:$0xff] }
 0x12b   :  { %v395_v13 = vmul.f32 1.050701, %v379_v7  ;;  %1077 = vmatprep.subr.mxu1 %v396_v8  ;;  %v1199_v21 = vpop.eup %1198  ;;  %v393_v22 = vmul.f32 1.050701, %v377_v9  ;;  %v914_v23 = vadd.f32 -1.0, %v1197_v18  ;;  %v375_v5 = vsel %vm359_vm5, %v1492_v1, %v343_v17  ;;  %v399_v7 = vld [vmem:[#allocation2 + $0x10] sm:$0xff] }
 0x12c   :  { %1078 = vmatpush3.msra.mxu1 %v396_v8  ;;  %v341_v24 = vmul.f32 1.6732632, %v916_v16  ;;  %v1201_v25 = vpop.eup %1200  ;;  %v392_v26 = vmul.f32 1.050701, %v376_v2  ;;  %v913_v27 = vadd.f32 -1.0, %v1199_v21  ;;  %v374_v0 = vsel %vm358_vm6, %v1483_v61, %v342_v20  ;;  %v401_v8 = vld [vmem:[#allocation2 + $0x20] sm:$0xff]  ;;  %v507_v20 = vpop.permute.xlu0 %506 }
 0x12d   :  { %1079 = vmatprep.subr.mxu1 %v395_v13  ;;  %v340_v28 = vmul.f32 1.6732632, %v915_v19  ;;  %v1203_v29 = vpop.eup %1202  ;;  %v391_v30 = vmul.f32 1.050701, %v375_v5  ;;  %v912_v32 = vadd.f32 -1.0, %v1201_v25  ;;  %v405_v12 = vld [vmem:[#allocation2 + $0x40] sm:$0xff]  ;;  %v497_v21 = vpop.permute.xlu1 %496 }
 0x12e   :  { %1080 = vmatpush3.msra.mxu1 %v395_v13  ;;  %v1205_v31 = vpop.eup %1204  ;;  %v339_v33 = vmul.f32 1.6732632, %v914_v23  ;;  %v373_v1 = vsel %vm357_vm7, %v1485_v62, %v341_v24  ;;  %v390_v34 = vmul.f32 1.050701, %v374_v0  ;;  %v911_v36 = vadd.f32 -1.0, %v1203_v29  ;;  %v406_v13 = vld [vmem:[#allocation2 + $0x48] sm:$0xff] }
 0x12f   :  { %1081 = vmatprep.subr.mxu1 %v394_v14  ;;  %v1207_v35 = vpop.eup %1206  ;;  %v338_v37 = vmul.f32 1.6732632, %v913_v27  ;;  %v372_v61 = vsel %vm356_vm8, %v1473_v57, %v340_v28  ;;  %v389_v38 = vmul.f32 1.050701, %v373_v1  ;;  %v910_v39 = vadd.f32 -1.0, %v1205_v31  ;;  %v407_v15 = vld [vmem:[#allocation2 + $0x50] sm:$0xff] }
 0x130   :  { %1082 = vmatpush3.msra.mxu1 %v394_v14  ;;  %v337_v40 = vmul.f32 1.6732632, %v912_v32  ;;  %v371_v41 = vsel %vm355_vm9, %v1475_v58, %v339_v33  ;;  %v1209_v62 = vpop.eup %1208  ;;  %v388_v42 = vmul.f32 1.050701, %v372_v61  ;;  %v909_v43 = vadd.f32 -1.0, %v1207_v35  ;;  %v408_v16 = vld [vmem:[#allocation2 + $0x58] sm:$0xff]  ;;  %v502_v24 = vpop.permute.xlu0 %501 }
 0x131   :  { %1083 = vmatprep.subr.mxu1 %v393_v22  ;;  %v336_v44 = vmul.f32 1.6732632, %v911_v36  ;;  %v370_v47 = vsel %vm354_vm10, %v1463_v53, %v338_v37  ;;  %v387_v57 = vmul.f32 1.050701, %v371_v41  ;;  %v908_v48 = vadd.f32 -1.0, %v1209_v62  ;;  %v409_v17 = vld [vmem:[#allocation2 + $0x60] sm:$0xff]  ;;  %v492_v25 = vpop.permute.xlu1 %491 }
 0x132   :  { %1084 = vmatpush3.msra.mxu1 %v393_v22  ;;  %v335_v51 = vmul.f32 1.6732632, %v910_v39  ;;  %v369_v52 = vsel %vm353_vm11, %v1465_v54, %v337_v40  ;;  %v386_v58 = vmul.f32 1.050701, %v370_v47  ;;  %v334_v55 = vmul.f32 1.6732632, %v909_v43 }
 0x133   :  { %1085 = vmatprep.subr.mxu1 %v392_v26  ;;  %v368_v56 = vsel %vm352_vm12, %v1453_v49, %v336_v44  ;;  %v385_v53 = vmul.f32 1.050701, %v369_v52  ;;  %v333_v59 = vmul.f32 1.6732632, %v908_v48  ;;  %v410_v9 = vld [vmem:[#allocation2 + $0x68] sm:$0xff]  ;;  %v411_v18 = vld [vmem:[#allocation2 + $0x70] sm:$0xff] }
 0x134   :  { %1086 = vmatpush3.msra.mxu1 %v392_v26  ;;  %v367_v60 = vsel %vm351_vm13, %v1455_v50, %v335_v51  ;;  %v384_v54 = vmul.f32 1.050701, %v368_v56  ;;  %v366_v63 = vsel %vm350_vm14, %v1443_v45, %v334_v55  ;;  %v398_v50 = vld [vmem:[#allocation2 + $0x8] sm:$0xff]  ;;  %v400_v45 = vld [vmem:[#allocation2 + $0x18] sm:$0xff]  ;;  %v1291_v19 = vmov 0.0   ;;  %v487_v28 = vpop.permute.xlu0 %486 }
 0x135   :  { %1087 = vmatprep.subr.mxu1 %v391_v30  ;;  %v383_v3 = vmul.f32 1.050701, %v367_v60  ;;  %v365_v49 = vsel %vm349_vm15, %v1445_v46, %v333_v59  ;;  %v382_v4 = vmul.f32 1.050701, %v366_v63  ;;  %v404_v46 = vld [vmem:[#allocation2 + $0x38] sm:$0xff]  ;;  %1133 = vmatprep.subr.mxu0 %v1291_v19  ;;  %v482_v29 = vpop.permute.xlu1 %481 }
 0x136   :  { %1088 = vmatpush3.msra.mxu1 %v391_v30  ;;  %v381_v6 = vmul.f32 1.050701, %v365_v49  ;;  %v412_v14 = vld [vmem:[#allocation2 + $0x78] sm:$0xff]  ;;  %1165 = vmatprep.mubr.msk.f32.mxu0 %vm1292_vm0, %v1291_v19 }
 0x137   :  { %1089 = vmatprep.subr.mxu1 %v390_v34 }
 0x138   :  { %1090 = vmatpush3.msra.mxu1 %v390_v34  ;;  %v477_v32 = vpop.permute.xlu0 %476 }
 0x139   :  { %1091 = vmatprep.subr.mxu1 %v389_v38  ;;  %v472_v1 = vpop.permute.xlu1 %471 }
 0x13a   :  { %1092 = vmatpush3.msra.mxu1 %v389_v38 }
 0x13b   :  { %1093 = vmatprep.subr.mxu1 %v388_v42 }
 0x13c   :  { %1094 = vmatpush3.msra.mxu1 %v388_v42  ;;  %v467_v36 = vpop.permute.xlu0 %466 }
 0x13d   :  { %1095 = vmatprep.subr.mxu1 %v387_v57  ;;  %v462_v38 = vpop.permute.xlu1 %461 }
 0x13e   :  { %1096 = vmatpush3.msra.mxu1 %v387_v57 }
 0x13f   :  { %1097 = vmatprep.subr.mxu1 %v386_v58 }
 0x140   :  { %1098 = vmatpush3.msra.mxu1 %v386_v58  ;;  %v457_v47 = vpop.permute.xlu0 %456 }
 0x141   :  { %1099 = vmatprep.subr.mxu1 %v385_v53  ;;  %v452_v55 = vpop.permute.xlu1 %451 }
 0x142   :  { %1100 = vmatpush3.msra.mxu1 %v385_v53 }
 0x143   :  { %1101 = vmatprep.subr.mxu1 %v384_v54 }
 0x144   :  { %1102 = vmatpush3.msra.mxu1 %v384_v54 }
 0x145   :  { %1103 = vmatprep.subr.mxu1 %v383_v3 }
 0x146   :  { %1104 = vmatpush3.msra.mxu1 %v383_v3 }
 0x147   :  { %1105 = vmatprep.subr.mxu1 %v382_v4 }
 0x148   :  { %1106 = vmatpush3.msra.mxu1 %v382_v4 }
 0x149   :  { %1107 = vmatprep.subr.mxu1 %v381_v6 }
 0x14a   :  { %1108 = vmatpush3.msra.mxu1 %v381_v6 }
 0x14b   :  { %1110 = vmatmul.mubr.f32.vlgmr.msra.gmra.mxu1 %v398_v50  ;;  %v447_v50 = vpop.permute.xlu0 %446 }
 0x14c   :  { %1112 = vmatprep.mubr.f32.mxu1 %v399_v7 }
 0x14f   :  { %1113 = vmatmul.mubr.f32.gmra.mxu1 %v400_v45 }
 0x150   :  { %1115 = vmatprep.mubr.f32.mxu1 %v401_v8 }
 0x153   :  { %1116 = vmatmul.mubr.f32.gmra.mxu1 %v402_v10 }
 0x154   :  { %1118 = vmatprep.mubr.f32.mxu1 %v403_v11  ;;  %v442_v11 = vpop.permute.xlu1 %441 }
 0x157   :  { %1119 = vmatmul.mubr.f32.gmra.mxu1 %v404_v46 }
 0x158   :  { %1121 = vmatprep.mubr.f32.mxu1 %v405_v12 }
 0x15b   :  { %1122 = vmatmul.mubr.f32.gmra.mxu1 %v406_v13 }
 0x15c   :  { %1124 = vmatprep.mubr.f32.mxu1 %v407_v15 }
 0x15f   :  { %1125 = vmatmul.mubr.f32.gmra.mxu1 %v408_v16 }
 0x160   :  { %1127 = vmatprep.mubr.f32.mxu1 %v409_v17 }
 0x163   :  { %1128 = vmatmul.mubr.f32.gmra.mxu1 %v410_v9  ;;  %v437_v9 = vpop.permute.xlu0 %436 }
 0x164   :  { %1130 = vmatprep.mubr.f32.mxu1 %v411_v18 }
 0x167   :  { %1131 = vmatmul.mubr.f32.gmra.mxu1 %v412_v14 }
 0x20b   :  { %v1547_v2 = vpop.f32.mrf.mxu1 }
 0x20d   :  { %v1549_v22 = vpop.f32.mrf.mxu1 }
 0x20f   :  { %v1551_v23 = vpop.f32.mrf.mxu1 }
 0x210   :  { %v1590_v18 = vadd.f32 %v1551_v23, %v447_v50 }
 0x211   :  { %v1553_v5 = vpop.f32.mrf.mxu1 }
 0x212   :  { %vm737_vm13 = vcmp.gt.f32.partialorder %v1590_v18, 0.0 }
 0x213   :  { %v1117_v26 = vpop.f32.mrf.mxu1 }
 0x214   :  { %v1583_v46 = vadd.f32 %v1117_v26, %v457_v47 }
 0x215   :  { %v595_v27 = vpop.f32.mrf.mxu1 }
 0x216   :  { %v1586_v15 = vadd.f32 %v595_v27, %v452_v55  ;;  %v659_v14 = vmin.f32 %v1583_v46, 0.0  ;;  %v1598_v27 = vadd.f32 %v1547_v2, %v437_v9  ;;  %vm739_vm11 = vcmp.gt.f32.partialorder %v1583_v46, 0.0 }
 0x217   :  { %v1120_v0 = vpop.f32.mrf.mxu1 }
 0x218   :  { %v1575_v63 = vadd.f32 %v1120_v0, %v467_v36  ;;  %v680_v0 = vmul.f32 1.442695, %v659_v14  ;;  %vm738_vm12 = vcmp.gt.f32.partialorder %v1586_v15, 0.0  ;;  %vm735_vm15 = vcmp.gt.f32.partialorder %v1598_v27, 0.0 }
 0x219   :  { %v605_v30 = vpop.f32.mrf.mxu1 }
 0x21a   :  { %v1579_v4 = vadd.f32 %v605_v30, %v462_v38  ;;  %v661_v12 = vmin.f32 %v1575_v63, 0.0  ;;  %vm741_vm9 = vcmp.gt.f32.partialorder %v1575_v63, 0.0 }
 0x21b   :  { %v1123_v31 = vpop.f32.mrf.mxu1 }
 0x21c   :  { %v1565_v57 = vadd.f32 %v1123_v31, %v477_v32  ;;  %v660_v16 = vmin.f32 %v1579_v4, 0.0  ;;  %v655_v32 = vmin.f32 %v1598_v27, 0.0  ;;  %vm740_vm10 = vcmp.gt.f32.partialorder %v1579_v4, 0.0 }
 0x21d   :  { %v615_v33 = vpop.f32.mrf.mxu1 }
 0x21e   :  { %v1568_v52 = vadd.f32 %v615_v33, %v472_v1  ;;  %v663_v3 = vmin.f32 %v1565_v57, 0.0  ;;  %v682_v26 = vmul.f32 1.442695, %v660_v16  ;;  %vm743_vm7 = vcmp.gt.f32.partialorder %v1565_v57, 0.0 }
 0x21f   :  { %v1126_v34 = vpop.f32.mrf.mxu1 }
 0x220   :  { %v1555_v61 = vadd.f32 %v1126_v34, %v487_v28  ;;  %v662_v7 = vmin.f32 %v1568_v52, 0.0  ;;  %v688_v13 = vmul.f32 1.442695, %v663_v3  ;;  %v657_v28 = vmin.f32 %v1590_v18, 0.0 }
 0x221   :  { %v625_v35 = vpop.f32.mrf.mxu1  ;;  %vm742_vm8 = vcmp.gt.f32.partialorder %v1568_v52, 0.0 }
 0x222   :  { %v1561_v62 = vadd.f32 %v625_v35, %v482_v29  ;;  %v665_v43 = vmin.f32 %v1555_v61, 0.0  ;;  %v686_v17 = vmul.f32 1.442695, %v662_v7  ;;  %v676_v1 = vmul.f32 1.442695, %v657_v28 }
 0x223   :  { %v1129_v37 = vpop.f32.mrf.mxu1  ;;  %vm745_vm5 = vcmp.gt.f32.partialorder %v1555_v61, 0.0 }
 0x224   :  { %v1557_v40 = vadd.f32 %v1129_v37, %v497_v21  ;;  %v664_v56 = vmin.f32 %v1561_v62, 0.0  ;;  %v692_v54 = vmul.f32 1.442695, %v665_v43  ;;  %v1594_v21 = vadd.f32 %v1553_v5, %v442_v11 }
 0x225   :  { %v635_v39 = vpop.f32.mrf.mxu1  ;;  %vm744_vm6 = vcmp.gt.f32.partialorder %v1561_v62, 0.0 }
 0x226   :  { %v1559_v41 = vadd.f32 %v635_v39, %v492_v25  ;;  %v667_v44 = vmin.f32 %v1557_v40, 0.0  ;;  %v690_v45 = vmul.f32 1.442695, %v664_v56  ;;  %v658_v25 = vmin.f32 %v1586_v15, 0.0 }
 0x227   :  { %v1132_v42 = vpop.f32.mrf.mxu1  ;;  %v656_v30 = vmin.f32 %v1594_v21, 0.0  ;;  %vm747_vm3 = vcmp.gt.f32.partialorder %v1557_v40, 0.0  ;;  %vm736_vm14 = vcmp.gt.f32.partialorder %v1594_v21, 0.0 }
 0x228   :  { %v666_v48 = vmin.f32 %v1559_v41, 0.0  ;;  %v696_v58 = vmul.f32 1.442695, %v667_v44  ;;  %v1571_v59 = vadd.f32 %v1132_v42, %v507_v20  ;;  %v684_v20 = vmul.f32 1.442695, %v661_v12 }
 0x229   :  { %v645_v51 = vpop.f32.mrf.mxu1  ;;  %v678_v5 = vmul.f32 1.442695, %v658_v25  ;;  %v674_v36 = vmul.f32 1.442695, %v656_v30  ;;  %v672_v42 = vmul.f32 1.442695, %v655_v32 }
 0x22a   :  { %v694_v53 = vmul.f32 1.442695, %v666_v48  ;;  %v1573_v60 = vadd.f32 %v645_v51, %v502_v24  ;;  %1210 = vpow2.f32 %v696_v58  ;;  %v669_v49 = vmin.f32 %v1571_v59, 0.0  ;;  %v432_v24 = vpop.permute.xlu1 %431 }
 0x22b   :  { %v1602_v29 = vadd.f32 %v1549_v22, %v432_v24  ;;  %vm749_vm1 = vcmp.gt.f32.partialorder %v1571_v59, 0.0  ;;  %vm746_vm4 = vcmp.gt.f32.partialorder %v1559_v41, 0.0 }
 0x22c   :  { %v668_v6 = vmin.f32 %v1573_v60, 0.0  ;;  %1212 = vpow2.f32 %v694_v53  ;;  %v700_v8 = vmul.f32 1.442695, %v669_v49  ;;  %vm748_vm2 = vcmp.gt.f32.partialorder %v1573_v60, 0.0 }
 0x22d   :  { %1214 = vpow2.f32 %v692_v54  ;;  %v654_v35 = vmin.f32 %v1602_v29, 0.0  ;;  %vm734_vm0 = vcmp.gt.f32.partialorder %v1602_v29, 0.0 }
 0x22e   :  { %v698_v10 = vmul.f32 1.442695, %v668_v6  ;;  %1216 = vpow2.f32 %v700_v8 }
 0x22f   :  { %v670_v58 = vmul.f32 1.442695, %v654_v35 }
 0x230   :  { %1218 = vpow2.f32 %v698_v10 }
 0x231   :  { %1220 = vpow2.f32 %v690_v45 }
 0x232   :  { %1222 = vpow2.f32 %v688_v13 }
 0x233   :  { %1224 = vpow2.f32 %v686_v17 }
 0x234   :  { %1226 = vpow2.f32 %v684_v20 }
 0x235   :  { %1228 = vpow2.f32 %v682_v26 }
 0x236   :  { %1230 = vpow2.f32 %v680_v0 }
 0x237   :  { %v1211_v23 = vpop.eup %1210  ;;  %1232 = vpow2.f32 %v678_v5 }
 0x238   :  { %v937_v2 = vadd.f32 -1.0, %v1211_v23  ;;  %1234 = vpow2.f32 %v676_v1 }
 0x239   :  { %v1213_v31 = vpop.eup %1212  ;;  %1236 = vpow2.f32 %v674_v36 }
 0x23a   :  { %v1215_v33 = vpop.eup %1214  ;;  %v936_v38 = vadd.f32 -1.0, %v1213_v31  ;;  %v731_v47 = vmul.f32 1.6732632, %v937_v2  ;;  %1238 = vpow2.f32 %v672_v42 }
 0x23b   :  { %v1217_v34 = vpop.eup %1216  ;;  %v935_v44 = vadd.f32 -1.0, %v1215_v33  ;;  %1240 = vpow2.f32 %v670_v58 }
 0x23c   :  { %v939_v22 = vadd.f32 -1.0, %v1217_v34  ;;  %v730_v53 = vmul.f32 1.6732632, %v936_v38  ;;  %v763_v45 = vsel %vm747_vm3, %v1557_v40, %v731_v47 }
 0x23d   :  { %v1219_v37 = vpop.eup %1218  ;;  %v729_v7 = vmul.f32 1.6732632, %v935_v44 }
 0x23e   :  { %v1221_v39 = vpop.eup %1220  ;;  %v938_v43 = vadd.f32 -1.0, %v1219_v37  ;;  %v733_v48 = vmul.f32 1.6732632, %v939_v22  ;;  %v762_v12 = vsel %vm746_vm4, %v1559_v41, %v730_v53 }
 0x23f   :  { %v1223_v51 = vpop.eup %1222  ;;  %v934_v56 = vadd.f32 -1.0, %v1221_v39  ;;  %v761_v40 = vsel %vm745_vm5, %v1555_v61, %v729_v7  ;;  %v778_v14 = vmul.f32 1.050701, %v762_v12 }
 0x240   :  { %v732_v55 = vmul.f32 1.6732632, %v938_v43  ;;  %v765_v54 = vsel %vm749_vm1, %v1571_v59, %v733_v48  ;;  %v1225_v3 = vpop.eup %1224  ;;  %v933_v50 = vadd.f32 -1.0, %v1223_v51  ;;  %v777_v26 = vmul.f32 1.050701, %v761_v40 }
 0x241   :  { %v781_v49 = vmul.f32 1.050701, %v765_v54  ;;  %v1227_v10 = vpop.eup %1226  ;;  %v932_v59 = vadd.f32 -1.0, %v1225_v3  ;;  %v728_v11 = vmul.f32 1.6732632, %v934_v56 }
 0x242   :  { %v764_v6 = vsel %vm748_vm2, %v1573_v60, %v732_v55  ;;  %v1229_v13 = vpop.eup %1228  ;;  %v779_v60 = vmul.f32 1.050701, %v763_v45  ;;  %v931_v16 = vadd.f32 -1.0, %v1227_v10  ;;  %v727_v17 = vmul.f32 1.6732632, %v933_v50 }
 0x243   :  { %v780_v8 = vmul.f32 1.050701, %v764_v6  ;;  %1134 = vmatpush3.msra.mxu0 %v781_v49  ;;  %v1231_v9 = vpop.eup %1230  ;;  %v930_v20 = vadd.f32 -1.0, %v1229_v13  ;;  %v726_v41 = vmul.f32 1.6732632, %v932_v59  ;;  %v760_v24 = vsel %vm744_vm6, %v1561_v62, %v728_v11  ;;  %v787_v49 = vpop.permute.xlu0 %786 }
 0x244   :  { %1135 = vmatprep.subr.mxu0 %v1291_v19  ;;  %v1233_v25 = vpop.eup %1232  ;;  %v929_v28 = vadd.f32 -1.0, %v1231_v9  ;;  %v725_v61 = vmul.f32 1.6732632, %v931_v16  ;;  %v759_v0 = vsel %vm743_vm7, %v1565_v57, %v727_v17  ;;  %v776_v30 = vmul.f32 1.050701, %v760_v24 }
 0x245   :  { %1136 = vmatpush3.msra.mxu0 %v780_v8  ;;  %v1235_v23 = vpop.eup %1234  ;;  %v928_v62 = vadd.f32 -1.0, %v1233_v25  ;;  %v724_v31 = vmul.f32 1.6732632, %v930_v20  ;;  %v758_v32 = vsel %vm742_vm8, %v1568_v52, %v726_v41  ;;  %v775_v33 = vmul.f32 1.050701, %v759_v0 }
 0x246   :  { %1137 = vmatprep.subr.mxu0 %v1291_v19  ;;  %v1237_v5 = vpop.eup %1236  ;;  %v927_v57 = vadd.f32 -1.0, %v1235_v23  ;;  %v723_v2 = vmul.f32 1.6732632, %v929_v28  ;;  %v757_v34 = vsel %vm741_vm9, %v1575_v63, %v725_v61  ;;  %v774_v35 = vmul.f32 1.050701, %v758_v32 }
 0x247   :  { %1138 = vmatpush3.msra.mxu0 %v779_v60  ;;  %v1239_v1 = vpop.eup %1238  ;;  %v926_v36 = vadd.f32 -1.0, %v1237_v5  ;;  %v722_v37 = vmul.f32 1.6732632, %v928_v62  ;;  %v756_v52 = vsel %vm740_vm10, %v1579_v4, %v724_v31  ;;  %v773_v22 = vmul.f32 1.050701, %v757_v34 }
 0x248   :  { %1139 = vmatprep.subr.mxu0 %v1291_v19  ;;  %v1241_v38 = vpop.eup %1240  ;;  %v925_v39 = vadd.f32 -1.0, %v1239_v1  ;;  %v721_v42 = vmul.f32 1.6732632, %v927_v57  ;;  %v755_v63 = vsel %vm739_vm11, %v1583_v46, %v723_v2  ;;  %v772_v43 = vmul.f32 1.050701, %v756_v52 }
 0x249   :  { %1140 = vmatpush3.msra.mxu0 %v778_v14  ;;  %v924_v44 = vadd.f32 -1.0, %v1241_v38  ;;  %v720_v47 = vmul.f32 1.6732632, %v926_v36  ;;  %v754_v4 = vsel %vm738_vm12, %v1586_v15, %v722_v37  ;;  %v771_v48 = vmul.f32 1.050701, %v755_v63 }
 0x24a   :  { %1141 = vmatprep.subr.mxu0 %v1291_v19  ;;  %v719_v51 = vmul.f32 1.6732632, %v925_v39  ;;  %v753_v58 = vsel %vm737_vm13, %v1590_v18, %v721_v42  ;;  %v770_v46 = vmul.f32 1.050701, %v754_v4 }
 0x24b   :  { %1142 = vmatpush3.msra.mxu0 %v777_v26  ;;  %v718_v55 = vmul.f32 1.6732632, %v924_v44  ;;  %v752_v56 = vsel %vm736_vm14, %v1594_v21, %v720_v47  ;;  %v769_v15 = vmul.f32 1.050701, %v753_v58 }
 0x24c   :  { %1143 = vmatprep.subr.mxu0 %v1291_v19  ;;  %v751_v53 = vsel %vm735_vm15, %v1598_v27, %v719_v51  ;;  %v768_v18 = vmul.f32 1.050701, %v752_v56  ;;  %v782_v27 = vld [vmem:[%s1664_s4] sm:$0xff] }
 0x24d   :  { %1144 = vmatpush3.msra.mxu0 %v776_v30  ;;  %v750_v54 = vsel %vm734_vm0, %v1602_v29, %v718_v55  ;;  %v767_v3 = vmul.f32 1.050701, %v751_v53 }
 0x24e   :  { %1145 = vmatprep.subr.mxu0 %v1291_v19  ;;  %v766_v21 = vmul.f32 1.050701, %v750_v54 }
 0x24f   :  { %1146 = vmatpush3.msra.mxu0 %v775_v33 }
 0x250   :  { %1147 = vmatprep.subr.mxu0 %v1291_v19 }
 0x251   :  { %1148 = vmatpush3.msra.mxu0 %v774_v35 }
 0x252   :  { %1149 = vmatprep.subr.mxu0 %v1291_v19 }
 0x253   :  { %1150 = vmatpush3.msra.mxu0 %v773_v22 }
 0x254   :  { %1151 = vmatprep.subr.mxu0 %v1291_v19 }
 0x255   :  { %1152 = vmatpush3.msra.mxu0 %v772_v43 }
 0x256   :  { %1153 = vmatprep.subr.mxu0 %v1291_v19 }
 0x257   :  { %1154 = vmatpush3.msra.mxu0 %v771_v48 }
 0x258   :  { %1155 = vmatprep.subr.mxu0 %v1291_v19 }
 0x259   :  { %1156 = vmatpush3.msra.mxu0 %v770_v46 }
 0x25a   :  { %1157 = vmatprep.subr.mxu0 %v1291_v19 }
 0x25b   :  { %1158 = vmatpush3.msra.mxu0 %v769_v15 }
 0x25c   :  { %1159 = vmatprep.subr.mxu0 %v1291_v19 }
 0x25d   :  { %1160 = vmatpush3.msra.mxu0 %v768_v18 }
 0x25e   :  { %1161 = vmatprep.subr.mxu0 %v1291_v19 }
 0x25f   :  { %1162 = vmatpush3.msra.mxu0 %v767_v3 }
 0x260   :  { %1163 = vmatprep.subr.mxu0 %v1291_v19 }
 0x261   :  { %1164 = vmatpush3.msra.mxu0 %v766_v21 }
 0x262   :  { %1166 = vmatmul.mubr.f32.vlgmr.msra.gmra.mxu0 %v782_v27 }
 0x322   :  { %v855_v29 = vpop.f32.mrf.mxu0 }
 0x323   :  { %v856_v6 = vadd.f32 %v855_v29, %v787_v49 }
 0x324   :  { %v1167_v50 = vpop.f32.mrf.mxu0 }
 0x325   :  { %859 = vst [vmem:[#allocation5] sm:$0xff] %v856_v6 }
 0x326   :  { %1273 = shalt.err (!%p1270_p9)
}
 0x327   :  { %869 = dma.vmem_to_hbm [thread:$0]  %s867_s17, 128, %s1666_s6, [#allocation4]  }
 0x328   :  { %1284 = dma.done.wait [#allocation4], 128  }
 0x329   :  { %1285 = vsyncadd [#allocation4], 4294967168 }
 0x32a   :  { %873 = vsyncpa [#allocation3], 1 }
 0x32b   :  { %874 = vsyncpa [#allocation4], 1 }

</bundles_post_ra>
